<compile_context>
chip_gen: v6e
topology: v6e:2x2x1
jax: 0.10.0
libtpu: 0.0.40
codegen_flags: <defaults>
</compile_context>

<pallas_src>
import jax
import jax.numpy as jnp
from jax import lax
from jax.experimental import pallas as pl
from jax.experimental.pallas import tpu as pltpu

IN_DIM = 768
HID_DIM = 512


def _cdiv(a, b):
    return -(-a // b)


def _round_up(x, m):
    return ((x + m - 1) // m) * m


def critic_kernel(x_ref, w1_ref, b1_ref, w2_ref, b2_ref, o_ref):
    # x_ref:  [TB, 768] f32  (batch tile, cast to bf16 in-kernel)
    # w1_ref: [768, 512] bf16 (resident across the grid)
    # b1_ref: [1, 512]   f32
    # w2_ref: [1, 512]   bf16 (row vector of the second Linear)
    # b2_ref: [1, 1]     f32
    # o_ref:  [1, TB]    f32  (lane-dense output row)
    x = x_ref[...].astype(jnp.bfloat16)
    h = jnp.dot(x, w1_ref[...], preferred_element_type=jnp.float32)     # MXU, f32 acc
    h = jnp.maximum(h + b1_ref[...], 0.0).astype(jnp.bfloat16)          # bias + ReLU
    # Dropout: identity in eval mode.
    # 512 -> 1 layer as [1,512] x [TB,512]^T on the MXU: lane-dense [1, TB] directly,
    # no masked stores and no [TB,1] -> [1,TB] relayout.
    v = lax.dot_general(w2_ref[...], h, (((1,), (1,)), ((), ())),
                        preferred_element_type=jnp.float32)
    o_ref[...] = (v + b2_ref[...]).astype(o_ref.dtype)


def _pick_tile_b(B, tile_max=1024, min_grid=2):
    """Adaptive batch tile.

    Small/medium batches run as a single tile (8-sublane granule; x is f32 in HBM).
    Large batches split into >= min_grid tiles (v7x megacore) with each tile a
    multiple of 128 so every output block stays lane-dense / unmasked.
    """
    if B <= 512:
        return _round_up(B, 8)
    n_tiles = max(_cdiv(B, tile_max), min_grid)
    return min(tile_max, _round_up(_cdiv(B, n_tiles), 128))


def critic_forward(state, w1, b1, w2, b2, *, tile_max=1024):
    """state: [B, 768] float32 -> PyTorch-style .squeeze() of the [B, 1] values."""
    B = state.shape[0]
    tile_b = _pick_tile_b(B, tile_max)
    B_pad = _round_up(B, tile_b)
    if B_pad != B:
        state = jnp.pad(state, ((0, B_pad - B), (0, 0)))
    n_tiles = B_pad // tile_b

    # Parameters: W1 / w2-row in bf16 (native MXU dtype, tiny one-time traffic),
    # biases in f32.  The activation `state` stays f32 and is cast in-kernel.
    w1_16 = w1.astype(jnp.bfloat16)
    b1_f32 = b1.reshape(1, HID_DIM).astype(jnp.float32)
    w2_row = w2.reshape(1, HID_DIM).astype(jnp.bfloat16)   # [512, 1] -> [1, 512]
    b2_f32 = b2.reshape(1, 1).astype(jnp.float32)

    cost = pl.CostEstimate(
        flops=2 * B_pad * IN_DIM * HID_DIM + 2 * B_pad * HID_DIM,
        transcendentals=0,
        bytes_accessed=(B_pad * IN_DIM * 4                 # x (f32, streamed)
                        + IN_DIM * HID_DIM * 2             # W1 (bf16, resident)
                        + HID_DIM * 4 + HID_DIM * 2 + 4    # b1, w2 row, b2
                        + B_pad * 4),                      # output row (f32)
    )

    out = pl.pallas_call(
        critic_kernel,
        out_shape=jax.ShapeDtypeStruct((1, B_pad), jnp.float32),
        grid_spec=pltpu.PrefetchScalarGridSpec(
            num_scalar_prefetch=0,
            grid=(n_tiles,),
            in_specs=[
                pl.BlockSpec((tile_b, IN_DIM), lambda i: (i, 0)),    # x tile
                pl.BlockSpec((IN_DIM, HID_DIM), lambda i: (0, 0)),   # W1 (constant)
                pl.BlockSpec((1, HID_DIM), lambda i: (0, 0)),        # b1
                pl.BlockSpec((1, HID_DIM), lambda i: (0, 0)),        # w2 row
                pl.BlockSpec((1, 1), lambda i: (0, 0)),              # b2
            ],
            out_specs=pl.BlockSpec((1, tile_b), lambda i: (0, i)),   # lane-dense row
        ),
        compiler_params=pltpu.CompilerParams(
            dimension_semantics=("parallel",),
            vmem_limit_bytes=32 * 1024 * 1024,
        ),
        cost_estimate=cost,
    )(state, w1_16, b1_f32, w2_row, b2_f32)

    values = out.reshape(-1)[:B]
    # Match PyTorch .squeeze(): [B] for B > 1, scalar for B == 1.
    return jnp.squeeze(values)


def critic_reference(state, w1, b1, w2, b2):
    """Plain-JAX reference with the same bf16 casts / f32 accumulation as the kernel."""
    h = jnp.maximum(
        jnp.dot(state.astype(jnp.bfloat16), w1.astype(jnp.bfloat16),
                preferred_element_type=jnp.float32) + b1.reshape(1, HID_DIM), 0.0)
    v = jnp.dot(h.astype(jnp.bfloat16), w2.astype(jnp.bfloat16),
                preferred_element_type=jnp.float32) + b2.reshape(1, 1)
    return jnp.squeeze(v)


def init_params(key):
    k1, k2, k3, k4 = jax.random.split(key, 4)
    lim1 = 1.0 / jnp.sqrt(IN_DIM)
    lim2 = 1.0 / jnp.sqrt(HID_DIM)
    w1 = jax.random.uniform(k1, (IN_DIM, HID_DIM), jnp.float32, -lim1, lim1)
    b1 = jax.random.uniform(k2, (1, HID_DIM), jnp.float32, -lim1, lim1)
    w2 = jax.random.uniform(k3, (HID_DIM, 1), jnp.float32, -lim2, lim2)
    b2 = jax.random.uniform(k4, (1, 1), jnp.float32, -lim2, lim2)
    return w1, b1, w2, b2


if __name__ == "__main__":
    key = jax.random.PRNGKey(0)
    kx, kp = jax.random.split(key)
    w1, b1, w2, b2 = init_params(kp)

    # B=8: single-tile small-batch path.  B=640: multi-tile, padded, lane-dense path.
    for B in (8, 640):
        state = jax.random.normal(jax.random.fold_in(kx, B), (B, IN_DIM), jnp.float32)
        out = jax.block_until_ready(critic_forward(state, w1, b1, w2, b2))
        ref = critic_reference(state, w1, b1, w2, b2)
        assert out.shape == (B,), (B, out.shape)
        assert jnp.allclose(out, ref, atol=5e-3, rtol=5e-3), (B, out, ref)

    print("KERNEL_OK")
</pallas_src>

<mosaic_0001>
module attributes {stable_mosaic.version = 11 : i64} {
  func.func @critic_kernel(%arg0: i32, %arg1: memref<8x768xf32, #tpu.memory_space<vmem>>, %arg2: memref<768x512xbf16, #tpu.memory_space<vmem>>, %arg3: memref<1x512xf32, #tpu.memory_space<vmem>>, %arg4: memref<1x512xbf16, #tpu.memory_space<vmem>>, %arg5: memref<1x1xf32, #tpu.memory_space<vmem>>, %arg6: memref<1x8xf32, #tpu.memory_space<vmem>>) attributes {dimension_semantics = [#tpu.dimension_semantics<parallel>], iteration_bounds = array<i64: 1>, scalar_prefetch = 0 : i64, scratch_operands = 0 : i64, tpu.core_type = #tpu.core_type<tc>, window_params = [{transform_indices = @transform_0, window_bounds = array<i64: 8, 768>}, {pipeline_mode = #tpu.pipeline_mode<synchronous>, transform_indices = @transform_1, window_bounds = array<i64: 768, 512>}, {pipeline_mode = #tpu.pipeline_mode<synchronous>, transform_indices = @transform_2, window_bounds = array<i64: 1, 512>}, {pipeline_mode = #tpu.pipeline_mode<synchronous>, transform_indices = @transform_3, window_bounds = array<i64: 1, 512>}, {pipeline_mode = #tpu.pipeline_mode<synchronous>, transform_indices = @transform_4, window_bounds = array<i64: 1, 1>}, {transform_indices = @transform_5, window_bounds = array<i64: 1, 8>}]} {
    %c0 = arith.constant 0 : index
    %c0_0 = arith.constant 0 : index
    %0 = vector.load %arg1[%c0, %c0_0] : memref<8x768xf32, #tpu.memory_space<vmem>>, vector<8x768xf32>
    %1 = arith.truncf %0 : vector<8x768xf32> to vector<8x768xbf16>
    %c0_1 = arith.constant 0 : index
    %c0_2 = arith.constant 0 : index
    %2 = vector.load %arg2[%c0_1, %c0_2] : memref<768x512xbf16, #tpu.memory_space<vmem>>, vector<768x512xbf16>
    %cst = arith.constant dense<0.000000e+00> : vector<8x512xf32>
    %3 = tpu.matmul %1, %2, %cst {dimension_numbers = #tpu.dot_dimension_numbers<[1], [0], [0], [1], [0, 0, 1, 1], [], []>} : vector<8x768xbf16>, vector<768x512xbf16>, vector<8x512xf32> -> vector<8x512xf32>
    %c0_3 = arith.constant 0 : index
    %c0_4 = arith.constant 0 : index
    %4 = vector.load %arg3[%c0_3, %c0_4] : memref<1x512xf32, #tpu.memory_space<vmem>>, vector<1x512xf32>
    %5 = vector.broadcast %4 : vector<1x512xf32> to vector<8x512xf32>
    %6 = arith.addf %3, %5 : vector<8x512xf32>
    %cst_5 = arith.constant 0.000000e+00 : f32
    %7 = vector.broadcast %cst_5 : f32 to vector<8x512xf32>
    %8 = arith.maximumf %6, %7 : vector<8x512xf32>
    %9 = arith.truncf %8 : vector<8x512xf32> to vector<8x512xbf16>
    %c0_6 = arith.constant 0 : index
    %c0_7 = arith.constant 0 : index
    %10 = vector.load %arg4[%c0_6, %c0_7] : memref<1x512xbf16, #tpu.memory_space<vmem>>, vector<1x512xbf16>
    %cst_8 = arith.constant dense<0.000000e+00> : vector<1x8xf32>
    %11 = tpu.matmul %10, %9, %cst_8 {dimension_numbers = #tpu.dot_dimension_numbers<[1], [1], [0], [0], [0, 0, 1, 0], [], []>} : vector<1x512xbf16>, vector<8x512xbf16>, vector<1x8xf32> -> vector<1x8xf32>
    %c0_9 = arith.constant 0 : index
    %c0_10 = arith.constant 0 : index
    %12 = vector.load %arg5[%c0_9, %c0_10] : memref<1x1xf32, #tpu.memory_space<vmem>>, vector<1x1xf32>
    %13 = vector.broadcast %12 : vector<1x1xf32> to vector<1x8xf32>
    %14 = arith.addf %11, %13 : vector<1x8xf32>
    %c0_11 = arith.constant 0 : index
    %c0_12 = arith.constant 0 : index
    %15 = vector.load %arg6[%c0_11, %c0_12] : memref<1x8xf32, #tpu.memory_space<vmem>>, vector<1x8xf32>
    tpu.vector_store %arg6[%c0_11, %c0_12], %14 {strides = array<i32>} : memref<1x8xf32, #tpu.memory_space<vmem>>, vector<1x8xf32>,
    return
  }
  func.func @transform_0(%arg0: i32) -> (i32, i32) {
    %c0_i32 = arith.constant 0 : i32
    %c0_i32_0 = arith.constant 0 : i32
    return %arg0, %c0_i32 : i32, i32
  }
  func.func @transform_1(%arg0: i32) -> (i32, i32) {
    %c0_i32 = arith.constant 0 : i32
    %c0_i32_0 = arith.constant 0 : i32
    %c0_i32_1 = arith.constant 0 : i32
    return %c0_i32, %c0_i32_0 : i32, i32
  }
  func.func @transform_2(%arg0: i32) -> (i32, i32) {
    %c0_i32 = arith.constant 0 : i32
    %c0_i32_0 = arith.constant 0 : i32
    %c0_i32_1 = arith.constant 0 : i32
    return %c0_i32, %c0_i32_0 : i32, i32
  }
  func.func @transform_3(%arg0: i32) -> (i32, i32) {
    %c0_i32 = arith.constant 0 : i32
    %c0_i32_0 = arith.constant 0 : i32
    %c0_i32_1 = arith.constant 0 : i32
    return %c0_i32, %c0_i32_0 : i32, i32
  }
  func.func @transform_4(%arg0: i32) -> (i32, i32) {
    %c0_i32 = arith.constant 0 : i32
    %c0_i32_0 = arith.constant 0 : i32
    %c0_i32_1 = arith.constant 0 : i32
    return %c0_i32, %c0_i32_0 : i32, i32
  }
  func.func @transform_5(%arg0: i32) -> (i32, i32) {
    %c0_i32 = arith.constant 0 : i32
    %c0_i32_0 = arith.constant 0 : i32
    return %c0_i32, %arg0 : i32, i32
  }
}

</mosaic_0001>

<bundles_post_ra>
// kernel: tpu_custom_call.1
= control target key start
LH: loop header
LB: loop body
LE: loop exit
PB: predicated region body
PF: predicated region fallthrough
CT: control target
= control target key end

     0   :  { %s2302_s0 = inlined_call_operand.hbm [shape: f32[8,768], index: 0, kind: input, shape index: {}]   ;;  %s2303_s1 = inlined_call_operand.hbm [shape: bf16[768,512], index: 1, kind: input, shape index: {}]   ;;  %s2304_s2 = inlined_call_operand.vmem [shape: f32[1,512], index: 2, kind: input, shape index: {}]   ;;  %s2305_s3 = inlined_call_operand.hbm [shape: bf16[1,512], index: 3, kind: input, shape index: {}]   ;;  %s2306_s4 = inlined_call_operand.<no memory space> [shape: f32[1,1], index: 4, kind: input, shape index: {}]   ;;  %s2307_s5 = inlined_call_operand.hbm [shape: f32[1,8], index: 5, kind: output, shape index: {}]  }
   0x1   :  { %v10_v0 = vstv %s2306_s4 }
   0x2   :  { %11 = vst [vmem:[#allocation2] sm:$0x1] %v10_v0 }
   0x3   :  { %12 = vsyncpa [#allocation4], 0 }
   0x4   :  { %13 = vsyncpa [#allocation7], 0 }
   0x5   :  { %14 = vsyncpa [#allocation5], 0  ;;  %s2215_s20 = smov [#allocation6]  }
   0x6   :  { %s30_s21 = sshll.u32 %s2215_s20, 4  ;;  %s31_s21 = int_to_ptr.vmem [resolvable:$true] %s30_s21 }
   0x7   :  { %s2137_s22 = scalar_lea.vmem %s31_s21, 24576  ;;  %p2142_p1 = scmp.lt.s32.totalorder %s31_s21, %s31_s21 }
   0x8   :  { %p2138_p0 = scmp.ne.s32.totalorder %s31_s21, %s2137_s22  ;;  %p2143_p2 = scmp.lt.s32.totalorder %s2137_s22, %s2137_s22 }
   0xa   :  { %p2144_p3 = por %p2143_p2, %p2142_p1 }
   0xc   :  { %p2145_p4 = pnand %p2144_p3, %p2138_p0 }
   0xe   :  { %2148 = shalt.err (!%p2145_p4)
}
   0xf   :  { %s2216_s23 = smov 256   ;;  %s2217_s24 = smov 16  }
  0x10   :  { %36 = dma.hbm_to_vmem [thread:$0]  %s2303_s1, 24576, %s31_s21, [#allocation7], %s2216_s23, %s2216_s23, %s2217_s24  }
  0x11   :  { %s2218_s4 = smov [#allocation3]   ;;  %s2219_s28 = smov [#allocation8]  }
  0x12   :  { %s21_s27 = sshll.u32 %s2218_s4, 4  ;;  %s45_s29 = sshll.u32 %s2219_s28, 4  ;;  %s22_s27 = int_to_ptr.vmem [resolvable:$true] %s21_s27  ;;  %s46_s29 = int_to_ptr.vmem [resolvable:$true] %s45_s29 }
  0x13   :  { %s2157_s30 = scalar_lea.vmem %s22_s27, 768  ;;  %p2162_p6 = scmp.lt.s32.totalorder %s22_s27, %s22_s27 }
  0x14   :  { %p2158_p5 = scmp.ne.s32.totalorder %s22_s27, %s2157_s30  ;;  %p2163_p7 = scmp.lt.s32.totalorder %s2157_s30, %s2157_s30 }
  0x16   :  { %p2164_p8 = por %p2163_p7, %p2162_p6 }
  0x18   :  { %p2165_p9 = pnand %p2164_p8, %p2158_p5 }
  0x1a   :  { %2168 = shalt.err (!%p2165_p9)
}
  0x1b   :  { %24 = dma.hbm_to_vmem [thread:$0]  %s2302_s0, 768, %s22_s27, [#allocation4]  }
  0x1c   :  { %s2177_s8 = scalar_lea.vmem %s46_s29, 64  ;;  %p2182_p11 = scmp.lt.s32.totalorder %s46_s29, %s46_s29 }
  0x1d   :  { %p2178_p10 = scmp.ne.s32.totalorder %s46_s29, %s2177_s8  ;;  %p2183_p12 = scmp.lt.s32.totalorder %s2177_s8, %s2177_s8 }
  0x1f   :  { %p2184_p13 = por %p2183_p12, %p2182_p11 }
  0x21   :  { %p2185_p0 = pnand %p2184_p13, %p2178_p10 }
  0x23   :  { %2188 = shalt.err (!%p2185_p0)
}
  0x24   :  { %48 = dma.hbm_to_vmem [thread:$0]  %s2305_s3, 64, %s46_s29, [#allocation7]  }
  0x25   :  { %2209 = dma.done.wait [#allocation4], 768  }
  0x26   :  { %2210 = vsyncadd [#allocation4], 4294966528 }
  0x27   :  { %2211 = dma.done.wait [#allocation7], 24640  }
  0x28   :  { %2212 = vsyncadd [#allocation7], 4294942656  ;;  %v1841_v1 = vld [vmem:[#allocation6 + $0xe4] ss:$16 sps:$4 sm:$0xff]   ;;  %v1845_v3 = vld [vmem:[#allocation6 + $0xe0] ss:$16 sps:$4 sm:$0xff]  }
  0x29   :  { %v1843_v2 = vld [vmem:[#allocation6 + $0x2e4] ss:$16 sps:$4 sm:$0xff]   ;;  %1247 = vmatprep.subr.bf16.mxu0 %v1841_v1  ;;  %v1846_v4 = vld [vmem:[#allocation6 + $0x2e0] ss:$16 sps:$4 sm:$0xff]   ;;  %v62_v47 = vld [vmem:[#allocation3 + $0x8] sm:$0xff]  ;;  %vm1621_vm0 = vcmask 57344  }
  0x2a   :  { %1288 = vmatprep.subr.bf16.mxu1 %v1843_v2  ;;  %v1847_v5 = vld [vmem:[#allocation6 + $0xc4] ss:$16 sps:$4 sm:$0xff]   ;;  %1248 = vmatpush1.bf16.msra.mxu0 %v1845_v3  ;;  %v1851_v7 = vld [vmem:[#allocation6 + $0xc0] ss:$16 sps:$4 sm:$0xff]   ;;  %v2265_v50 = vpack.c.bf16 %v62_v47, %v62_v47  ;;  %v64_v51 = vld [vmem:[#allocation3 + $0x18] sm:$0xff] }
  0x2b   :  { %1289 = vmatpush1.bf16.msra.mxu1 %v1846_v4  ;;  %v1849_v6 = vld [vmem:[#allocation6 + $0x2c4] ss:$16 sps:$4 sm:$0xff]   ;;  %1249 = vmatprep.subr.bf16.mxu0 %v1847_v5  ;;  %v1852_v8 = vld [vmem:[#allocation6 + $0x2c0] ss:$16 sps:$4 sm:$0xff]   ;;  %v2267_v53 = vpack.c.bf16 %v64_v51, %v64_v51 }
  0x2c   :  { %1290 = vmatprep.subr.bf16.mxu1 %v1849_v6  ;;  %v1853_v9 = vld [vmem:[#allocation6 + $0xa4] ss:$16 sps:$4 sm:$0xff]   ;;  %v1857_v11 = vld [vmem:[#allocation6 + $0xa0] ss:$16 sps:$4 sm:$0xff]   ;;  %1279 = vmatprep.mubr.bf16.mxu0 %v2265_v50 }
  0x2d   :  { %v1855_v10 = vld [vmem:[#allocation6 + $0x2a4] ss:$16 sps:$4 sm:$0xff]   ;;  %v1858_v12 = vld [vmem:[#allocation6 + $0x2a0] ss:$16 sps:$4 sm:$0xff]   ;;  %1320 = vmatprep.mubr.bf16.mxu1 %v2267_v53 }
  0x2e   :  { %1250 = vmatpush1.bf16.msra.mxu0 %v1851_v7  ;;  %v1859_v13 = vld [vmem:[#allocation6 + $0x84] ss:$16 sps:$4 sm:$0xff]   ;;  %v1863_v15 = vld [vmem:[#allocation6 + $0x80] ss:$16 sps:$4 sm:$0xff]  }
  0x2f   :  { %1291 = vmatpush1.bf16.msra.mxu1 %v1852_v8  ;;  %1251 = vmatprep.subr.bf16.mxu0 %v1853_v9  ;;  %v1861_v14 = vld [vmem:[#allocation6 + $0x284] ss:$16 sps:$4 sm:$0xff]   ;;  %v1864_v16 = vld [vmem:[#allocation6 + $0x280] ss:$16 sps:$4 sm:$0xff]   ;;  %v1942_v8 = vld [vmem:[#allocation6 + $0xec] ss:$16 sps:$4 sm:$0xff]  }
  0x30   :  { %1292 = vmatprep.subr.bf16.mxu1 %v1855_v10  ;;  %v1865_v17 = vld [vmem:[#allocation6 + $0x64] ss:$16 sps:$4 sm:$0xff]   ;;  %v1869_v19 = vld [vmem:[#allocation6 + $0x60] ss:$16 sps:$4 sm:$0xff]  }
  0x31   :  { %v1867_v18 = vld [vmem:[#allocation6 + $0x264] ss:$16 sps:$4 sm:$0xff]   ;;  %v1870_v20 = vld [vmem:[#allocation6 + $0x260] ss:$16 sps:$4 sm:$0xff]  }
  0x32   :  { %1252 = vmatpush1.bf16.msra.mxu0 %v1857_v11  ;;  %v1871_v21 = vld [vmem:[#allocation6 + $0x44] ss:$16 sps:$4 sm:$0xff]   ;;  %v1875_v23 = vld [vmem:[#allocation6 + $0x40] ss:$16 sps:$4 sm:$0xff]  }
  0x33   :  { %1293 = vmatpush1.bf16.msra.mxu1 %v1858_v12  ;;  %1253 = vmatprep.subr.bf16.mxu0 %v1859_v13  ;;  %v1873_v22 = vld [vmem:[#allocation6 + $0x244] ss:$16 sps:$4 sm:$0xff]   ;;  %v1876_v24 = vld [vmem:[#allocation6 + $0x240] ss:$16 sps:$4 sm:$0xff]   ;;  %v1940_v12 = vld [vmem:[#allocation6 + $0xe8] ss:$16 sps:$4 sm:$0xff]  }
  0x34   :  { %1294 = vmatprep.subr.bf16.mxu1 %v1861_v14  ;;  %v1877_v25 = vld [vmem:[#allocation6 + $0x24] ss:$16 sps:$4 sm:$0xff]   ;;  %v1881_v27 = vld [vmem:[#allocation6 + $0x20] ss:$16 sps:$4 sm:$0xff]   ;;  %v1948_v14 = vld [vmem:[#allocation6 + $0xcc] ss:$16 sps:$4 sm:$0xff]  }
  0x35   :  { %v1879_v26 = vld [vmem:[#allocation6 + $0x224] ss:$16 sps:$4 sm:$0xff]   ;;  %v1882_v28 = vld [vmem:[#allocation6 + $0x220] ss:$16 sps:$4 sm:$0xff]  }
  0x36   :  { %1254 = vmatpush1.bf16.msra.mxu0 %v1863_v15  ;;  %v1883_v29 = vld [vmem:[#allocation6 + $0x4] ss:$16 sps:$4 sm:$0xff]   ;;  %v1887_v31 = vld [vmem:[#allocation6] ss:$16 sps:$4 sm:$0xff]  }
  0x37   :  { %1295 = vmatpush1.bf16.msra.mxu1 %v1864_v16  ;;  %1255 = vmatprep.subr.bf16.mxu0 %v1865_v17  ;;  %v1885_v30 = vld [vmem:[#allocation6 + $0x204] ss:$16 sps:$4 sm:$0xff]   ;;  %v1888_v32 = vld [vmem:[#allocation6 + $0x200] ss:$16 sps:$4 sm:$0xff]   ;;  %v1946_v16 = vld [vmem:[#allocation6 + $0xc8] ss:$16 sps:$4 sm:$0xff]  }
  0x38   :  { %1296 = vmatprep.subr.bf16.mxu1 %v1867_v18  ;;  %v1889_v33 = vld [vmem:[#allocation6 + $0x1e4] ss:$16 sps:$4 sm:$0xff]   ;;  %v1893_v35 = vld [vmem:[#allocation6 + $0x1e0] ss:$16 sps:$4 sm:$0xff]   ;;  %v1954_v18 = vld [vmem:[#allocation6 + $0xac] ss:$16 sps:$4 sm:$0xff]  }
  0x39   :  { %v1891_v34 = vld [vmem:[#allocation6 + $0x3e4] ss:$16 sps:$4 sm:$0xff]   ;;  %v1894_v36 = vld [vmem:[#allocation6 + $0x3e0] ss:$16 sps:$4 sm:$0xff]  }
  0x3a   :  { %1256 = vmatpush1.bf16.msra.mxu0 %v1869_v19  ;;  %v1895_v37 = vld [vmem:[#allocation6 + $0x1c4] ss:$16 sps:$4 sm:$0xff]   ;;  %v1899_v39 = vld [vmem:[#allocation6 + $0x1c0] ss:$16 sps:$4 sm:$0xff]  }
  0x3b   :  { %1297 = vmatpush1.bf16.msra.mxu1 %v1870_v20  ;;  %1257 = vmatprep.subr.bf16.mxu0 %v1871_v21  ;;  %v1897_v38 = vld [vmem:[#allocation6 + $0x3c4] ss:$16 sps:$4 sm:$0xff]   ;;  %v1900_v40 = vld [vmem:[#allocation6 + $0x3c0] ss:$16 sps:$4 sm:$0xff]   ;;  %v1952_v20 = vld [vmem:[#allocation6 + $0xa8] ss:$16 sps:$4 sm:$0xff]  }
  0x3c   :  { %1298 = vmatprep.subr.bf16.mxu1 %v1873_v22  ;;  %v1901_v41 = vld [vmem:[#allocation6 + $0x1a4] ss:$16 sps:$4 sm:$0xff]   ;;  %v1905_v43 = vld [vmem:[#allocation6 + $0x1a0] ss:$16 sps:$4 sm:$0xff]   ;;  %v1960_v22 = vld [vmem:[#allocation6 + $0x8c] ss:$16 sps:$4 sm:$0xff]  }
  0x3d   :  { %v1903_v42 = vld [vmem:[#allocation6 + $0x3a4] ss:$16 sps:$4 sm:$0xff]   ;;  %v1906_v44 = vld [vmem:[#allocation6 + $0x3a0] ss:$16 sps:$4 sm:$0xff]  }
  0x3e   :  { %1258 = vmatpush1.bf16.msra.mxu0 %v1875_v23  ;;  %v1907_v45 = vld [vmem:[#allocation6 + $0x184] ss:$16 sps:$4 sm:$0xff]   ;;  %v1911_v48 = vld [vmem:[#allocation6 + $0x180] ss:$16 sps:$4 sm:$0xff]  }
  0x3f   :  { %1299 = vmatpush1.bf16.msra.mxu1 %v1876_v24  ;;  %1259 = vmatprep.subr.bf16.mxu0 %v1877_v25  ;;  %v1909_v46 = vld [vmem:[#allocation6 + $0x384] ss:$16 sps:$4 sm:$0xff]   ;;  %v1912_v49 = vld [vmem:[#allocation6 + $0x380] ss:$16 sps:$4 sm:$0xff]   ;;  %v1958_v24 = vld [vmem:[#allocation6 + $0x88] ss:$16 sps:$4 sm:$0xff]  }
  0x40   :  { %1300 = vmatprep.subr.bf16.mxu1 %v1879_v26  ;;  %v1913_v52 = vld [vmem:[#allocation6 + $0x164] ss:$16 sps:$4 sm:$0xff]   ;;  %v1917_v55 = vld [vmem:[#allocation6 + $0x160] ss:$16 sps:$4 sm:$0xff]   ;;  %v1966_v26 = vld [vmem:[#allocation6 + $0x6c] ss:$16 sps:$4 sm:$0xff]  }
  0x41   :  { %v1915_v54 = vld [vmem:[#allocation6 + $0x364] ss:$16 sps:$4 sm:$0xff]   ;;  %v1918_v56 = vld [vmem:[#allocation6 + $0x360] ss:$16 sps:$4 sm:$0xff]  }
  0x42   :  { %1260 = vmatpush1.bf16.msra.mxu0 %v1881_v27  ;;  %v1919_v57 = vld [vmem:[#allocation6 + $0x144] ss:$16 sps:$4 sm:$0xff]   ;;  %v1923_v59 = vld [vmem:[#allocation6 + $0x140] ss:$16 sps:$4 sm:$0xff]  }
  0x43   :  { %1301 = vmatpush1.bf16.msra.mxu1 %v1882_v28  ;;  %1261 = vmatprep.subr.bf16.mxu0 %v1883_v29  ;;  %v1921_v58 = vld [vmem:[#allocation6 + $0x344] ss:$16 sps:$4 sm:$0xff]   ;;  %v1924_v60 = vld [vmem:[#allocation6 + $0x340] ss:$16 sps:$4 sm:$0xff]   ;;  %v1964_v28 = vld [vmem:[#allocation6 + $0x68] ss:$16 sps:$4 sm:$0xff]  }
  0x44   :  { %1302 = vmatprep.subr.bf16.mxu1 %v1885_v30  ;;  %v1925_v61 = vld [vmem:[#allocation6 + $0x124] ss:$16 sps:$4 sm:$0xff]   ;;  %v1929_v63 = vld [vmem:[#allocation6 + $0x120] ss:$16 sps:$4 sm:$0xff]   ;;  %v1972_v30 = vld [vmem:[#allocation6 + $0x4c] ss:$16 sps:$4 sm:$0xff]  }
  0x45   :  { %v1927_v62 = vld [vmem:[#allocation6 + $0x324] ss:$16 sps:$4 sm:$0xff]   ;;  %v1930_v0 = vld [vmem:[#allocation6 + $0x320] ss:$16 sps:$4 sm:$0xff]  }
  0x46   :  { %1262 = vmatpush1.bf16.msra.mxu0 %v1887_v31  ;;  %v1931_v1 = vld [vmem:[#allocation6 + $0x104] ss:$16 sps:$4 sm:$0xff]   ;;  %v1935_v3 = vld [vmem:[#allocation6 + $0x100] ss:$16 sps:$4 sm:$0xff]  }
  0x47   :  { %1303 = vmatpush1.bf16.msra.mxu1 %v1888_v32  ;;  %1263 = vmatprep.subr.bf16.mxu0 %v1889_v33  ;;  %v1933_v2 = vld [vmem:[#allocation6 + $0x304] ss:$16 sps:$4 sm:$0xff]   ;;  %v1936_v4 = vld [vmem:[#allocation6 + $0x300] ss:$16 sps:$4 sm:$0xff]   ;;  %v1970_v32 = vld [vmem:[#allocation6 + $0x48] ss:$16 sps:$4 sm:$0xff]  }
  0x48   :  { %1304 = vmatprep.subr.bf16.mxu1 %v1891_v34  ;;  %v61_v5 = vld [vmem:[#allocation3] sm:$0xff]  ;;  %v63_v6 = vld [vmem:[#allocation3 + $0x10] sm:$0xff]  ;;  %v1978_v34 = vld [vmem:[#allocation6 + $0x2c] ss:$16 sps:$4 sm:$0xff]  }
  0x49   :  { %v1939_v7 = vld [vmem:[#allocation6 + $0x4e4] ss:$16 sps:$4 sm:$0xff]   ;;  %v2271_v9 = vpack.c.bf16 %v61_v5, %v61_v5  ;;  %v2273_v10 = vpack.c.bf16 %v63_v6, %v63_v6  ;;  %v1937_v11 = vld [vmem:[#allocation6 + $0x4e0] ss:$16 sps:$4 sm:$0xff]   ;;  %v2026_v5 = vld [vmem:[#allocation6 + $0x12c] ss:$16 sps:$4 sm:$0xff]  }
  0x4a   :  { %1264 = vmatpush2.bf16.msra.mxu0 %v1893_v35  ;;  %v1945_v13 = vld [vmem:[#allocation6 + $0x4c4] ss:$16 sps:$4 sm:$0xff]   ;;  %v1943_v15 = vld [vmem:[#allocation6 + $0x4c0] ss:$16 sps:$4 sm:$0xff]   ;;  %v66_v35 = vld [vmem:[#allocation3 + $0x28] sm:$0xff] }
  0x4b   :  { %1305 = vmatpush2.bf16.msra.mxu1 %v1894_v36  ;;  %1265 = vmatprep.subr.bf16.mxu0 %v1895_v37  ;;  %v1951_v17 = vld [vmem:[#allocation6 + $0x4a4] ss:$16 sps:$4 sm:$0xff]   ;;  %v1949_v19 = vld [vmem:[#allocation6 + $0x4a0] ss:$16 sps:$4 sm:$0xff]   ;;  %v2278_v36 = vpack.c.bf16 %v66_v35, %v66_v35  ;;  %v2068_v35 = vld [vmem:[#allocation6 + $0x44c] ss:$16 sps:$4 sm:$0xff]  }
  0x4c   :  { %1306 = vmatprep.subr.bf16.mxu1 %v1897_v38  ;;  %v1957_v21 = vld [vmem:[#allocation6 + $0x484] ss:$16 sps:$4 sm:$0xff]   ;;  %v1955_v23 = vld [vmem:[#allocation6 + $0x480] ss:$16 sps:$4 sm:$0xff]   ;;  %v1976_v38 = vld [vmem:[#allocation6 + $0x28] ss:$16 sps:$4 sm:$0xff]  }
  0x4d   :  { %v1963_v25 = vld [vmem:[#allocation6 + $0x464] ss:$16 sps:$4 sm:$0xff]   ;;  %v1961_v27 = vld [vmem:[#allocation6 + $0x460] ss:$16 sps:$4 sm:$0xff]  }
  0x4e   :  { %1266 = vmatpush2.bf16.msra.mxu0 %v1899_v39  ;;  %v1969_v29 = vld [vmem:[#allocation6 + $0x444] ss:$16 sps:$4 sm:$0xff]   ;;  %v1967_v31 = vld [vmem:[#allocation6 + $0x440] ss:$16 sps:$4 sm:$0xff]  }
  0x4f   :  { %1307 = vmatpush2.bf16.msra.mxu1 %v1900_v40  ;;  %1267 = vmatprep.subr.bf16.mxu0 %v1901_v41  ;;  %v1975_v33 = vld [vmem:[#allocation6 + $0x424] ss:$16 sps:$4 sm:$0xff]   ;;  %v1973_v37 = vld [vmem:[#allocation6 + $0x420] ss:$16 sps:$4 sm:$0xff]   ;;  %v1984_v40 = vld [vmem:[#allocation6 + $0xc] ss:$16 sps:$4 sm:$0xff]  }
  0x50   :  { %1308 = vmatprep.subr.bf16.mxu1 %v1903_v42  ;;  %v1981_v39 = vld [vmem:[#allocation6 + $0x404] ss:$16 sps:$4 sm:$0xff]   ;;  %v1979_v41 = vld [vmem:[#allocation6 + $0x400] ss:$16 sps:$4 sm:$0xff]   ;;  %v1982_v42 = vld [vmem:[#allocation6 + $0x8] ss:$16 sps:$4 sm:$0xff]  }
  0x51   :  { %v1993_v47 = vld [vmem:[#allocation6 + $0x5c4] ss:$16 sps:$4 sm:$0xff]   ;;  %v2021_v6 = vld [vmem:[#allocation6 + $0x520] ss:$16 sps:$4 sm:$0xff]  }
  0x52   :  { %1268 = vmatpush2.bf16.msra.mxu0 %v1905_v43  ;;  %v1987_v43 = vld [vmem:[#allocation6 + $0x5e4] ss:$16 sps:$4 sm:$0xff]  }
  0x53   :  { %1309 = vmatpush2.bf16.msra.mxu1 %v1906_v44  ;;  %1269 = vmatprep.subr.bf16.mxu0 %v1907_v45  ;;  %v1990_v44 = vld [vmem:[#allocation6 + $0x1ec] ss:$16 sps:$4 sm:$0xff]   ;;  %v1985_v45 = vld [vmem:[#allocation6 + $0x5e0] ss:$16 sps:$4 sm:$0xff]   ;;  %v1999_v51 = vld [vmem:[#allocation6 + $0x5a4] ss:$16 sps:$4 sm:$0xff]  }
  0x54   :  { %1310 = vmatprep.subr.bf16.mxu1 %v1909_v46  ;;  %v1988_v46 = vld [vmem:[#allocation6 + $0x1e8] ss:$16 sps:$4 sm:$0xff]  }
  0x56   :  { %1270 = vmatpush2.bf16.msra.mxu0 %v1911_v48  ;;  %v1996_v48 = vld [vmem:[#allocation6 + $0x1cc] ss:$16 sps:$4 sm:$0xff]  }
  0x57   :  { %1311 = vmatpush2.bf16.msra.mxu1 %v1912_v49  ;;  %1271 = vmatprep.subr.bf16.mxu0 %v1913_v52  ;;  %v1991_v49 = vld [vmem:[#allocation6 + $0x5c0] ss:$16 sps:$4 sm:$0xff]   ;;  %v2002_v52 = vld [vmem:[#allocation6 + $0x1ac] ss:$16 sps:$4 sm:$0xff]  }
  0x58   :  { %1312 = vmatprep.subr.bf16.mxu1 %v1915_v54  ;;  %v1997_v54 = vld [vmem:[#allocation6 + $0x5a0] ss:$16 sps:$4 sm:$0xff]  }
  0x5a   :  { %1272 = vmatpush2.bf16.msra.mxu0 %v1917_v55  ;;  %v2000_v55 = vld [vmem:[#allocation6 + $0x1a8] ss:$16 sps:$4 sm:$0xff]  }
  0x5b   :  { %1313 = vmatpush2.bf16.msra.mxu1 %v1918_v56  ;;  %1273 = vmatprep.subr.bf16.mxu0 %v1919_v57  ;;  %v2005_v56 = vld [vmem:[#allocation6 + $0x584] ss:$16 sps:$4 sm:$0xff]   ;;  %v2008_v57 = vld [vmem:[#allocation6 + $0x18c] ss:$16 sps:$4 sm:$0xff]  }
  0x5c   :  { %1314 = vmatprep.subr.bf16.mxu1 %v1921_v58  ;;  %v2003_v58 = vld [vmem:[#allocation6 + $0x580] ss:$16 sps:$4 sm:$0xff]  }
  0x5e   :  { %1274 = vmatpush2.bf16.msra.mxu0 %v1923_v59  ;;  %v2006_v59 = vld [vmem:[#allocation6 + $0x188] ss:$16 sps:$4 sm:$0xff]  }
  0x5f   :  { %1315 = vmatpush2.bf16.msra.mxu1 %v1924_v60  ;;  %1275 = vmatprep.subr.bf16.mxu0 %v1925_v61  ;;  %v2011_v60 = vld [vmem:[#allocation6 + $0x564] ss:$16 sps:$4 sm:$0xff]   ;;  %v2014_v61 = vld [vmem:[#allocation6 + $0x16c] ss:$16 sps:$4 sm:$0xff]  }
  0x60   :  { %1316 = vmatprep.subr.bf16.mxu1 %v1927_v62  ;;  %v2009_v62 = vld [vmem:[#allocation6 + $0x560] ss:$16 sps:$4 sm:$0xff]  }
  0x62   :  { %1276 = vmatpush2.bf16.msra.mxu0 %v1929_v63  ;;  %v2012_v63 = vld [vmem:[#allocation6 + $0x168] ss:$16 sps:$4 sm:$0xff]  }
  0x63   :  { %1317 = vmatpush2.bf16.msra.mxu1 %v1930_v0  ;;  %1277 = vmatprep.subr.bf16.mxu0 %v1931_v1  ;;  %v2017_v0 = vld [vmem:[#allocation6 + $0x544] ss:$16 sps:$4 sm:$0xff]   ;;  %v2020_v1 = vld [vmem:[#allocation6 + $0x14c] ss:$16 sps:$4 sm:$0xff]  }
  0x64   :  { %1318 = vmatprep.subr.bf16.mxu1 %v1933_v2  ;;  %v2015_v2 = vld [vmem:[#allocation6 + $0x540] ss:$16 sps:$4 sm:$0xff]  }
  0x66   :  { %1278 = vmatpush2.bf16.msra.mxu0 %v1935_v3  ;;  %v2018_v3 = vld [vmem:[#allocation6 + $0x148] ss:$16 sps:$4 sm:$0xff]  }
  0x67   :  { %1319 = vmatpush2.bf16.msra.mxu1 %v1936_v4  ;;  %1329 = vmatprep.subr.bf16.mxu0 %v1939_v7  ;;  %v2023_v4 = vld [vmem:[#allocation6 + $0x524] ss:$16 sps:$4 sm:$0xff]   ;;  %v2024_v7 = vld [vmem:[#allocation6 + $0x128] ss:$16 sps:$4 sm:$0xff]  }
  0x68   :  { %1370 = vmatprep.subr.bf16.mxu1 %v1942_v8  ;;  %v2029_v8 = vld [vmem:[#allocation6 + $0x504] ss:$16 sps:$4 sm:$0xff]  }
  0x69   :  { %1280 = vmatmul.mubr.bf16.vlgmr.msra.gmra.mxu0 %v2271_v9 }
  0x6a   :  { %1321 = vmatmul.mubr.bf16.vlgmr.msra.gmra.mxu1 %v2273_v10  ;;  %1330 = vmatpush1.bf16.msra.mxu0 %v1937_v11  ;;  %v2032_v11 = vld [vmem:[#allocation6 + $0x10c] ss:$16 sps:$4 sm:$0xff]  }
  0x6b   :  { %1371 = vmatpush1.bf16.msra.mxu1 %v1940_v12  ;;  %1331 = vmatprep.subr.bf16.mxu0 %v1945_v13  ;;  %v2027_v12 = vld [vmem:[#allocation6 + $0x500] ss:$16 sps:$4 sm:$0xff]   ;;  %v2030_v13 = vld [vmem:[#allocation6 + $0x108] ss:$16 sps:$4 sm:$0xff]  }
  0x6c   :  { %1372 = vmatprep.subr.bf16.mxu1 %v1948_v14  ;;  %1402 = vmatprep.mubr.bf16.mxu1 %v2265_v50  ;;  %v1994_v50 = vld [vmem:[#allocation6 + $0x1c8] ss:$16 sps:$4 sm:$0xff]   ;;  %v65_v14 = vld [vmem:[#allocation3 + $0x20] sm:$0xff] }
  0x6d   :  { %1361 = vmatprep.mubr.bf16.mxu0 %v2278_v36 }
  0x6e   :  { %1332 = vmatpush1.bf16.msra.mxu0 %v1943_v15  ;;  %v2035_v15 = vld [vmem:[#allocation6 + $0x2ec] ss:$16 sps:$4 sm:$0xff]  }
  0x6f   :  { %1373 = vmatpush1.bf16.msra.mxu1 %v1946_v16  ;;  %1333 = vmatprep.subr.bf16.mxu0 %v1951_v17  ;;  %v2038_v16 = vld [vmem:[#allocation6 + $0x4ec] ss:$16 sps:$4 sm:$0xff]   ;;  %v2281_v17 = vpack.c.bf16 %v65_v14, %v65_v14 }
  0x70   :  { %1374 = vmatprep.subr.bf16.mxu1 %v1954_v18  ;;  %v2033_v18 = vld [vmem:[#allocation6 + $0x2e8] ss:$16 sps:$4 sm:$0xff]   ;;  %v2128_v14 = vld [vmem:[#allocation6 + $0x50c] ss:$16 sps:$4 sm:$0xff]  }
  0x72   :  { %1334 = vmatpush1.bf16.msra.mxu0 %v1949_v19  ;;  %v2036_v19 = vld [vmem:[#allocation6 + $0x4e8] ss:$16 sps:$4 sm:$0xff]  }
  0x73   :  { %1375 = vmatpush1.bf16.msra.mxu1 %v1952_v20  ;;  %1335 = vmatprep.subr.bf16.mxu0 %v1957_v21  ;;  %v2041_v20 = vld [vmem:[#allocation6 + $0x2cc] ss:$16 sps:$4 sm:$0xff]  }
  0x74   :  { %1376 = vmatprep.subr.bf16.mxu1 %v1960_v22  ;;  %v2044_v21 = vld [vmem:[#allocation6 + $0x4cc] ss:$16 sps:$4 sm:$0xff]   ;;  %v2039_v22 = vld [vmem:[#allocation6 + $0x2c8] ss:$16 sps:$4 sm:$0xff]  }
  0x76   :  { %1336 = vmatpush1.bf16.msra.mxu0 %v1955_v23  ;;  %v2042_v23 = vld [vmem:[#allocation6 + $0x4c8] ss:$16 sps:$4 sm:$0xff]  }
  0x77   :  { %1377 = vmatpush1.bf16.msra.mxu1 %v1958_v24  ;;  %1337 = vmatprep.subr.bf16.mxu0 %v1963_v25  ;;  %v2047_v24 = vld [vmem:[#allocation6 + $0x2ac] ss:$16 sps:$4 sm:$0xff]  }
  0x78   :  { %1378 = vmatprep.subr.bf16.mxu1 %v1966_v26  ;;  %v2050_v25 = vld [vmem:[#allocation6 + $0x4ac] ss:$16 sps:$4 sm:$0xff]   ;;  %v2045_v26 = vld [vmem:[#allocation6 + $0x2a8] ss:$16 sps:$4 sm:$0xff]  }
  0x7a   :  { %1338 = vmatpush1.bf16.msra.mxu0 %v1961_v27  ;;  %v2048_v27 = vld [vmem:[#allocation6 + $0x4a8] ss:$16 sps:$4 sm:$0xff]  }
  0x7b   :  { %1379 = vmatpush1.bf16.msra.mxu1 %v1964_v28  ;;  %1339 = vmatprep.subr.bf16.mxu0 %v1969_v29  ;;  %v2053_v28 = vld [vmem:[#allocation6 + $0x28c] ss:$16 sps:$4 sm:$0xff]   ;;  %v2051_v29 = vld [vmem:[#allocation6 + $0x288] ss:$16 sps:$4 sm:$0xff]  }
  0x7c   :  { %1380 = vmatprep.subr.bf16.mxu1 %v1972_v30  ;;  %v2054_v30 = vld [vmem:[#allocation6 + $0x488] ss:$16 sps:$4 sm:$0xff]  }
  0x7e   :  { %1340 = vmatpush1.bf16.msra.mxu0 %v1967_v31  ;;  %v2059_v31 = vld [vmem:[#allocation6 + $0x26c] ss:$16 sps:$4 sm:$0xff]  }
  0x7f   :  { %1381 = vmatpush1.bf16.msra.mxu1 %v1970_v32  ;;  %1341 = vmatprep.subr.bf16.mxu0 %v1975_v33  ;;  %v2062_v32 = vld [vmem:[#allocation6 + $0x46c] ss:$16 sps:$4 sm:$0xff]   ;;  %v2060_v33 = vld [vmem:[#allocation6 + $0x468] ss:$16 sps:$4 sm:$0xff]  }
  0x80   :  { %1382 = vmatprep.subr.bf16.mxu1 %v1978_v34  ;;  %v2065_v34 = vld [vmem:[#allocation6 + $0x24c] ss:$16 sps:$4 sm:$0xff]  }
  0x82   :  { %1342 = vmatpush1.bf16.msra.mxu0 %v1973_v37  ;;  %v2066_v37 = vld [vmem:[#allocation6 + $0x448] ss:$16 sps:$4 sm:$0xff]  }
  0x83   :  { %1383 = vmatpush1.bf16.msra.mxu1 %v1976_v38  ;;  %1343 = vmatprep.subr.bf16.mxu0 %v1981_v39  ;;  %v2071_v38 = vld [vmem:[#allocation6 + $0x22c] ss:$16 sps:$4 sm:$0xff]  }
  0x84   :  { %1384 = vmatprep.subr.bf16.mxu1 %v1984_v40  ;;  %v2074_v39 = vld [vmem:[#allocation6 + $0x42c] ss:$16 sps:$4 sm:$0xff]   ;;  %v2069_v40 = vld [vmem:[#allocation6 + $0x228] ss:$16 sps:$4 sm:$0xff]  }
  0x86   :  { %1344 = vmatpush1.bf16.msra.mxu0 %v1979_v41  ;;  %v2072_v41 = vld [vmem:[#allocation6 + $0x428] ss:$16 sps:$4 sm:$0xff]  }
  0x87   :  { %1385 = vmatpush1.bf16.msra.mxu1 %v1982_v42  ;;  %1345 = vmatprep.subr.bf16.mxu0 %v1987_v43  ;;  %v2077_v42 = vld [vmem:[#allocation6 + $0x20c] ss:$16 sps:$4 sm:$0xff]  }
  0x88   :  { %1386 = vmatprep.subr.bf16.mxu1 %v1990_v44  ;;  %v2080_v43 = vld [vmem:[#allocation6 + $0x40c] ss:$16 sps:$4 sm:$0xff]   ;;  %v2075_v44 = vld [vmem:[#allocation6 + $0x208] ss:$16 sps:$4 sm:$0xff]  }
  0x8a   :  { %1346 = vmatpush2.bf16.msra.mxu0 %v1985_v45  ;;  %v2078_v45 = vld [vmem:[#allocation6 + $0x408] ss:$16 sps:$4 sm:$0xff]  }
  0x8b   :  { %1387 = vmatpush2.bf16.msra.mxu1 %v1988_v46  ;;  %1347 = vmatprep.subr.bf16.mxu0 %v1993_v47  ;;  %v2083_v46 = vld [vmem:[#allocation6 + $0x3ec] ss:$16 sps:$4 sm:$0xff]  }
  0x8c   :  { %1388 = vmatprep.subr.bf16.mxu1 %v1996_v48  ;;  %v2086_v47 = vld [vmem:[#allocation6 + $0x5ec] ss:$16 sps:$4 sm:$0xff]   ;;  %v2081_v48 = vld [vmem:[#allocation6 + $0x3e8] ss:$16 sps:$4 sm:$0xff]  }
  0x8e   :  { %1348 = vmatpush2.bf16.msra.mxu0 %v1991_v49  ;;  %v2084_v49 = vld [vmem:[#allocation6 + $0x5e8] ss:$16 sps:$4 sm:$0xff]  }
  0x8f   :  { %1389 = vmatpush2.bf16.msra.mxu1 %v1994_v50  ;;  %1349 = vmatprep.subr.bf16.mxu0 %v1999_v51  ;;  %v2089_v50 = vld [vmem:[#allocation6 + $0x3cc] ss:$16 sps:$4 sm:$0xff]  }
  0x90   :  { %1390 = vmatprep.subr.bf16.mxu1 %v2002_v52  ;;  %v2092_v51 = vld [vmem:[#allocation6 + $0x5cc] ss:$16 sps:$4 sm:$0xff]   ;;  %v2087_v52 = vld [vmem:[#allocation6 + $0x3c8] ss:$16 sps:$4 sm:$0xff]  }
  0x92   :  { %1350 = vmatpush2.bf16.msra.mxu0 %v1997_v54  ;;  %v2090_v54 = vld [vmem:[#allocation6 + $0x5c8] ss:$16 sps:$4 sm:$0xff]  }
  0x93   :  { %1391 = vmatpush2.bf16.msra.mxu1 %v2000_v55  ;;  %1351 = vmatprep.subr.bf16.mxu0 %v2005_v56  ;;  %v2095_v55 = vld [vmem:[#allocation6 + $0x3ac] ss:$16 sps:$4 sm:$0xff]  }
  0x94   :  { %1392 = vmatprep.subr.bf16.mxu1 %v2008_v57  ;;  %v2098_v56 = vld [vmem:[#allocation6 + $0x5ac] ss:$16 sps:$4 sm:$0xff]   ;;  %v2093_v57 = vld [vmem:[#allocation6 + $0x3a8] ss:$16 sps:$4 sm:$0xff]  }
  0x96   :  { %1352 = vmatpush2.bf16.msra.mxu0 %v2003_v58  ;;  %v2096_v58 = vld [vmem:[#allocation6 + $0x5a8] ss:$16 sps:$4 sm:$0xff]  }
  0x97   :  { %1393 = vmatpush2.bf16.msra.mxu1 %v2006_v59  ;;  %1353 = vmatprep.subr.bf16.mxu0 %v2011_v60  ;;  %v2101_v59 = vld [vmem:[#allocation6 + $0x38c] ss:$16 sps:$4 sm:$0xff]  }
  0x98   :  { %1394 = vmatprep.subr.bf16.mxu1 %v2014_v61  ;;  %v2104_v60 = vld [vmem:[#allocation6 + $0x58c] ss:$16 sps:$4 sm:$0xff]   ;;  %v2099_v61 = vld [vmem:[#allocation6 + $0x388] ss:$16 sps:$4 sm:$0xff]  }
  0x9a   :  { %1354 = vmatpush2.bf16.msra.mxu0 %v2009_v62  ;;  %v2102_v62 = vld [vmem:[#allocation6 + $0x588] ss:$16 sps:$4 sm:$0xff]  }
  0x9b   :  { %1395 = vmatpush2.bf16.msra.mxu1 %v2012_v63  ;;  %1355 = vmatprep.subr.bf16.mxu0 %v2017_v0  ;;  %v2107_v63 = vld [vmem:[#allocation6 + $0x36c] ss:$16 sps:$4 sm:$0xff]  }
  0x9c   :  { %1396 = vmatprep.subr.bf16.mxu1 %v2020_v1  ;;  %v2110_v0 = vld [vmem:[#allocation6 + $0x56c] ss:$16 sps:$4 sm:$0xff]   ;;  %v2105_v1 = vld [vmem:[#allocation6 + $0x368] ss:$16 sps:$4 sm:$0xff]  }
  0x9e   :  { %1356 = vmatpush2.bf16.msra.mxu0 %v2015_v2  ;;  %v2108_v2 = vld [vmem:[#allocation6 + $0x568] ss:$16 sps:$4 sm:$0xff]  }
  0x9f   :  { %1397 = vmatpush2.bf16.msra.mxu1 %v2018_v3  ;;  %1357 = vmatprep.subr.bf16.mxu0 %v2023_v4  ;;  %v2113_v3 = vld [vmem:[#allocation6 + $0x34c] ss:$16 sps:$4 sm:$0xff]  }
  0xa0   :  { %1398 = vmatprep.subr.bf16.mxu1 %v2026_v5  ;;  %v2116_v4 = vld [vmem:[#allocation6 + $0x54c] ss:$16 sps:$4 sm:$0xff]   ;;  %v2111_v5 = vld [vmem:[#allocation6 + $0x348] ss:$16 sps:$4 sm:$0xff]  }
  0xa2   :  { %1358 = vmatpush2.bf16.msra.mxu0 %v2021_v6  ;;  %v2114_v6 = vld [vmem:[#allocation6 + $0x548] ss:$16 sps:$4 sm:$0xff]  }
  0xa3   :  { %1399 = vmatpush2.bf16.msra.mxu1 %v2024_v7  ;;  %1359 = vmatprep.subr.bf16.mxu0 %v2029_v8  ;;  %v2119_v7 = vld [vmem:[#allocation6 + $0x32c] ss:$16 sps:$4 sm:$0xff]  }
  0xa4   :  { %1400 = vmatprep.subr.bf16.mxu1 %v2032_v11  ;;  %v2122_v8 = vld [vmem:[#allocation6 + $0x52c] ss:$16 sps:$4 sm:$0xff]   ;;  %v2117_v11 = vld [vmem:[#allocation6 + $0x328] ss:$16 sps:$4 sm:$0xff]  }
  0xa6   :  { %1360 = vmatpush2.bf16.msra.mxu0 %v2027_v12  ;;  %v2120_v12 = vld [vmem:[#allocation6 + $0x528] ss:$16 sps:$4 sm:$0xff]  }
  0xa7   :  { %1401 = vmatpush2.bf16.msra.mxu1 %v2030_v13  ;;  %1411 = vmatprep.subr.bf16.mxu0 %v2035_v15  ;;  %v2125_v13 = vld [vmem:[#allocation6 + $0x30c] ss:$16 sps:$4 sm:$0xff]   ;;  %v2123_v15 = vld [vmem:[#allocation6 + $0x308] ss:$16 sps:$4 sm:$0xff]  }
  0xa8   :  { %1452 = vmatprep.subr.bf16.mxu1 %v2038_v16  ;;  %v2126_v16 = vld [vmem:[#allocation6 + $0x508] ss:$16 sps:$4 sm:$0xff]  }
  0xa9   :  { %1362 = vmatmul.mubr.bf16.vlgmr.msra.gmra.mxu0 %v2281_v17 }
  0xaa   :  { %1403 = vmatmul.mubr.bf16.vlgmr.msra.gmra.mxu1 %v2271_v9  ;;  %1412 = vmatpush1.bf16.msra.mxu0 %v2033_v18  ;;  %v2056_v9 = vld [vmem:[#allocation6 + $0x48c] ss:$16 sps:$4 sm:$0xff]  }
  0xab   :  { %1453 = vmatpush1.bf16.msra.mxu1 %v2036_v19  ;;  %1413 = vmatprep.subr.bf16.mxu0 %v2041_v20  ;;  %v267_v20 = vlaneseq }
  0xac   :  { %1454 = vmatprep.subr.bf16.mxu1 %v2044_v21  ;;  %1443 = vmatprep.mubr.bf16.mxu0 %v2267_v53  ;;  %v2057_v53 = vld [vmem:[#allocation6 + $0x268] ss:$16 sps:$4 sm:$0xff]  }
  0xad   :  { %1484 = vmatprep.mubr.bf16.mxu1 %v2278_v36  ;;  %v2063_v36 = vld [vmem:[#allocation6 + $0x248] ss:$16 sps:$4 sm:$0xff]  }
  0xae   :  { %1414 = vmatpush1.bf16.msra.mxu0 %v2039_v22 }
  0xaf   :  { %1455 = vmatpush1.bf16.msra.mxu1 %v2042_v23  ;;  %1415 = vmatprep.subr.bf16.mxu0 %v2047_v24 }
  0xb0   :  { %1456 = vmatprep.subr.bf16.mxu1 %v2050_v25  ;;  %v2220_v25 = vmov 1966171168  }
  0xb2   :  { %1416 = vmatpush1.bf16.msra.mxu0 %v2045_v26  ;;  %v1522_v26 = vunpack.c.l.s4 %v2220_v25 }
  0xb3   :  { %1457 = vmatpush1.bf16.msra.mxu1 %v2048_v27  ;;  %1417 = vmatprep.subr.bf16.mxu0 %v2053_v28  ;;  %v2289_v27 = vshrl.u32 %v267_v20, 7 }
  0xb4   :  { %1458 = vmatprep.subr.bf16.mxu1 %v2056_v9 }
  0xb6   :  { %1418 = vmatpush1.bf16.msra.mxu0 %v2051_v29  ;;  %v1523_v29 = vunpack.c.0.s8 %v1522_v26 }
  0xb7   :  { %1459 = vmatpush1.bf16.msra.mxu1 %v2054_v30  ;;  %1419 = vmatprep.subr.bf16.mxu0 %v2059_v31  ;;  %v1831_v30 = vld.sshfl [vmem:[#allocation8] sm:$0x33 pattern:$0x75316420] }
  0xb8   :  { %1460 = vmatprep.subr.bf16.mxu1 %v2062_v32  ;;  %v1520_v31 = vcombine.high %v1831_v30, %v1831_v30 }
  0xba   :  { %1420 = vmatpush1.bf16.msra.mxu0 %v2057_v53 }
  0xbb   :  { %1461 = vmatpush1.bf16.msra.mxu1 %v2060_v33  ;;  %1421 = vmatprep.subr.bf16.mxu0 %v2065_v34  ;;  %v1502_v33 = vld [vmem:[#allocation2] sm:$0x1]  ;;  %v2221_v34 = vmov 0  }
  0xbc   :  { %1462 = vmatprep.subr.bf16.mxu1 %v2068_v35  ;;  %1840 = vset.pattern.permute.xlu0 %v2221_v34  ;;  %v269_v35 = vsub.s32 0, %v2289_v27 }
  0xbd   :  { %1505 = vperm.xlu0 %1840, %v1502_v33  }
  0xbe   :  { %1422 = vmatpush1.bf16.msra.mxu0 %v2063_v36  ;;  %v265_v36 = vld [vmem:[%s2304_s2] sm:$0xf]  ;;  %s2222_s2 = smov [#allocation9]  }
  0xbf   :  { %1463 = vmatpush1.bf16.msra.mxu1 %v2066_v37  ;;  %1423 = vmatprep.subr.bf16.mxu0 %v2071_v38  ;;  %v273_v37 = vsub.s32 1, %v2289_v27  ;;  %v270_v38 = vrot.slane %v265_v36, %v269_v35  ;;  %s1629_s10 = sshll.u32 %s2222_s2, 4  ;;  %s1630_s10 = int_to_ptr.vmem [resolvable:$true] %s1629_s10 }
  0xc0   :  { %1464 = vmatprep.subr.bf16.mxu1 %v2074_v39  ;;  %s2189_s11 = scalar_lea.vmem %s1630_s10, 16  ;;  %s2193_s12 = scalar_lea.vmem %s1630_s10, 32 }
  0xc1   :  { %v274_v39 = vrot.slane %v265_v36, %v273_v37  ;;  %p2190_p1 = scmp.ne.s32.totalorder %s1630_s10, %s2189_s11  ;;  %p2194_p2 = scmp.lt.s32.totalorder %s1630_s10, %s1630_s10 }
  0xc2   :  { %1424 = vmatpush1.bf16.msra.mxu0 %v2069_v40  ;;  %p2195_p3 = scmp.lt.s32.totalorder %s2193_s12, %s2189_s11 }
  0xc3   :  { %1465 = vmatpush1.bf16.msra.mxu1 %v2072_v41  ;;  %1425 = vmatprep.subr.bf16.mxu0 %v2077_v42 }
  0xc4   :  { %1466 = vmatprep.subr.bf16.mxu1 %v2080_v43  ;;  %p2196_p4 = por %p2195_p3, %p2194_p2 }
  0xc6   :  { %1426 = vmatpush1.bf16.msra.mxu0 %v2075_v44  ;;  %p2197_p5 = pnand %p2196_p4, %p2190_p1 }
  0xc7   :  { %1467 = vmatpush1.bf16.msra.mxu1 %v2078_v45  ;;  %1427 = vmatprep.subr.bf16.mxu0 %v2083_v46 }
  0xc8   :  { %1468 = vmatprep.subr.bf16.mxu1 %v2086_v47 }
  0xca   :  { %1428 = vmatpush2.bf16.msra.mxu0 %v2081_v48 }
  0xcb   :  { %1469 = vmatpush2.bf16.msra.mxu1 %v2084_v49  ;;  %1429 = vmatprep.subr.bf16.mxu0 %v2089_v50 }
  0xcc   :  { %1470 = vmatprep.subr.bf16.mxu1 %v2092_v51 }
  0xce   :  { %1430 = vmatpush2.bf16.msra.mxu0 %v2087_v52 }
  0xcf   :  { %1471 = vmatpush2.bf16.msra.mxu1 %v2090_v54  ;;  %1431 = vmatprep.subr.bf16.mxu0 %v2095_v55 }
  0xd0   :  { %1472 = vmatprep.subr.bf16.mxu1 %v2098_v56 }
  0xd2   :  { %1432 = vmatpush2.bf16.msra.mxu0 %v2093_v57 }
  0xd3   :  { %1473 = vmatpush2.bf16.msra.mxu1 %v2096_v58  ;;  %1433 = vmatprep.subr.bf16.mxu0 %v2101_v59  ;;  %v277_v59 = vsub.s32 2, %v2289_v27 }
  0xd4   :  { %1474 = vmatprep.subr.bf16.mxu1 %v2104_v60  ;;  %v281_v60 = vsub.s32 3, %v2289_v27 }
  0xd6   :  { %1434 = vmatpush2.bf16.msra.mxu0 %v2099_v61  ;;  %v278_v61 = vrot.slane %v265_v36, %v277_v59 }
  0xd7   :  { %1475 = vmatpush2.bf16.msra.mxu1 %v2102_v62  ;;  %1435 = vmatprep.subr.bf16.mxu0 %v2107_v63  ;;  %v282_v62 = vrot.slane %v265_v36, %v281_v60 }
  0xd8   :  { %1476 = vmatprep.subr.bf16.mxu1 %v2110_v0 }
  0xda   :  { %1436 = vmatpush2.bf16.msra.mxu0 %v2105_v1 }
  0xdb   :  { %1477 = vmatpush2.bf16.msra.mxu1 %v2108_v2  ;;  %1437 = vmatprep.subr.bf16.mxu0 %v2113_v3 }
  0xdc   :  { %1478 = vmatprep.subr.bf16.mxu1 %v2116_v4 }
  0xde   :  { %1438 = vmatpush2.bf16.msra.mxu0 %v2111_v5 }
  0xdf   :  { %1479 = vmatpush2.bf16.msra.mxu1 %v2114_v6  ;;  %1439 = vmatprep.subr.bf16.mxu0 %v2119_v7 }
  0xe0   :  { %1480 = vmatprep.subr.bf16.mxu1 %v2122_v8 }
  0xe2   :  { %1440 = vmatpush2.bf16.msra.mxu0 %v2117_v11 }
  0xe3   :  { %1481 = vmatpush2.bf16.msra.mxu1 %v2120_v12  ;;  %1441 = vmatprep.subr.bf16.mxu0 %v2125_v13 }
  0xe4   :  { %1482 = vmatprep.subr.bf16.mxu1 %v2128_v14 }
  0xe6   :  { %1442 = vmatpush2.bf16.msra.mxu0 %v2123_v15 }
  0xe7   :  { %1483 = vmatpush2.bf16.msra.mxu1 %v2126_v16 }
  0xe9   :  { %1444 = vmatmul.mubr.bf16.vlgmr.msra.gmra.mxu0 %v2273_v10  ;;  %v1526_v10 = vsub.s32 %v1523_v29, %v2289_v27 }
  0xea   :  { %1485 = vmatmul.mubr.bf16.vlgmr.msra.gmra.mxu1 %v2281_v17 }
  0xeb   :  { %v1534_v32 = vrot.slane %v1520_v31, %v1526_v10  ;;  %v1527_v17 = vrot.slane %v1831_v30, %v1526_v10 }
  0xed   :  { %1573 = vmatprep.mubr.bf16.mxu0 %v1534_v32  ;;  %v1536_v53 = vcombine.high %v1534_v32, %v1534_v32  ;;  %v1535_v20 = vcombine.high %v1527_v17, %v1527_v17 }
  0xef   :  { %1613 = vmatprep.mubr.bf16.mxu1 %v1536_v53 }
 0x129   :  { %v1281_v18 = vpop.f32.mrf.mxu0 }
 0x12a   :  { %v1322_v19 = vpop.f32.mrf.mxu1  ;;  %v1282_v40 = vadd.f32 %v1281_v18, %v270_v38 }
 0x12b   :  { %v1283_v21 = vpop.f32.mrf.mxu0 }
 0x12c   :  { %v1324_v22 = vpop.f32.mrf.mxu1  ;;  %v1284_v41 = vadd.f32 %v1283_v21, %v274_v39  ;;  %v1323_v42 = vadd.f32 %v1322_v19, %v1282_v40 }
 0x12d   :  { %v1285_v23 = vpop.f32.mrf.mxu0 }
 0x12e   :  { %v1326_v24 = vpop.f32.mrf.mxu1  ;;  %v1325_v45 = vadd.f32 %v1324_v22, %v1284_v41 }
 0x12f   :  { %v1286_v28 = vpop.f32.mrf.mxu0 }
 0x130   :  { %v1327_v9 = vpop.f32.mrf.mxu1 }
 0x138   :  { %v1506_v25 = vpop.permute.xlu0 %1505 }
 0x139   :  { %v1511_v26 = vrot.slane %v1506_v25, %v269_v35 }
 0x169   :  { %v1363_v43 = vpop.f32.mrf.mxu0 }
 0x16a   :  { %v1404_v44 = vpop.f32.mrf.mxu1  ;;  %v1364_v46 = vadd.f32 %v1363_v43, %v1323_v42 }
 0x16b   :  { %v1365_v47 = vpop.f32.mrf.mxu0  ;;  %v1405_v63 = vadd.f32 %v1404_v44, %v278_v61 }
 0x16c   :  { %v1406_v48 = vpop.f32.mrf.mxu1  ;;  %v1366_v49 = vadd.f32 %v1365_v47, %v1325_v45  ;;  %v1493_v50 = vmax.f32 %v1364_v46, 0.0 }
 0x16d   :  { %v1367_v51 = vpop.f32.mrf.mxu0  ;;  %v1407_v2 = vadd.f32 %v1406_v48, %v282_v62 }
 0x16e   :  { %v1408_v52 = vpop.f32.mrf.mxu1  ;;  %v1494_v54 = vmax.f32 %v1366_v49, 0.0  ;;  %v1497_v58 = vpack.c.bf16 %v1493_v50, %v1493_v50 }
 0x16f   :  { %v1368_v55 = vpop.f32.mrf.mxu0 }
 0x170   :  { %v1409_v56 = vpop.f32.mrf.mxu1  ;;  %v1498_v57 = vpack.c.bf16 %v1494_v54, %v1494_v54 }
 0x172   :  { %1555 = vmatprep.subr.bf16.mxu0 %v1498_v57 }
 0x173   :  { %1556 = vmatpush1.bf16.xpose.msra.mxu0 %v1497_v58 }
 0x17a   :  { %1574 = vmatmul.mubr.bf16.vlgmr.msra.gmra.mxu0 %v1527_v17 }
 0x1a9   :  { %v1445_v0 = vpop.f32.mrf.mxu0 }
 0x1aa   :  { %v1486_v1 = vpop.f32.mrf.mxu1  ;;  %v1446_v3 = vadd.f32 %v1445_v0, %v1405_v63 }
 0x1ab   :  { %v1447_v4 = vpop.f32.mrf.mxu0 }
 0x1ac   :  { %v1488_v5 = vpop.f32.mrf.mxu1  ;;  %v1487_v6 = vadd.f32 %v1486_v1, %v1446_v3  ;;  %v1448_v7 = vadd.f32 %v1447_v4, %v1407_v2 }
 0x1ad   :  { %v1449_v8 = vpop.f32.mrf.mxu0 }
 0x1ae   :  { %v1490_v11 = vpop.f32.mrf.mxu1  ;;  %v1489_v12 = vadd.f32 %v1488_v5, %v1448_v7  ;;  %v1495_v13 = vmax.f32 %v1487_v6, 0.0 }
 0x1af   :  { %v1450_v14 = vpop.f32.mrf.mxu0 }
 0x1b0   :  { %v1491_v15 = vpop.f32.mrf.mxu1  ;;  %v1496_v16 = vmax.f32 %v1489_v12, 0.0  ;;  %v1499_v19 = vpack.c.bf16 %v1495_v13, %v1495_v13 }
 0x1b2   :  { %v1500_v18 = vpack.c.bf16 %v1496_v16, %v1496_v16 }
 0x1b4   :  { %1595 = vmatprep.subr.bf16.mxu1 %v1500_v18 }
 0x1b5   :  { %1596 = vmatpush1.bf16.xpose.msra.mxu1 %v1499_v19 }
 0x1bc   :  { %1614 = vmatmul.mubr.bf16.vlgmr.msra.gmra.mxu1 %v1535_v20 }
 0x23a   :  { %v1575_v21 = vpop.f32.mrf.mxu0 }
 0x23b   :  { %v1576_v27 = vadd.f32 %v1575_v21, %v1511_v26 }
 0x23c   :  { %v1577_v22 = vpop.f32.mrf.mxu0 }
 0x23e   :  { %v1578_v23 = vpop.f32.mrf.mxu0 }
 0x240   :  { %v1579_v24 = vpop.f32.mrf.mxu0 }
 0x27c   :  { %v1615_v28 = vpop.f32.mrf.mxu1 }
 0x27d   :  { %v1616_v9 = vadd.f32 %v1615_v28, %v1576_v27 }
 0x27e   :  { %v1617_v29 = vpop.f32.mrf.mxu1 }
 0x27f   :  { %1622 = vst.msk [vmem:[#allocation9] sm:$0x1] %vm1621_vm0, %v1616_v9 }
 0x280   :  { %v1618_v30 = vpop.f32.mrf.mxu1 }
 0x281   :  { %2200 = shalt.err (!%p2197_p5)
}
 0x282   :  { %1632 = dma.vmem_to_hbm [thread:$0]  %s1630_s10, 16, %s2307_s5, [#allocation5]   ;;  %v1619_v31 = vpop.f32.mrf.mxu1 }
 0x283   :  { %2213 = dma.done.wait [#allocation5], 16  }
 0x284   :  { %2214 = vsyncadd [#allocation5], 4294967280 }
 0x285   :  { %1636 = vsyncpa [#allocation4], 1 }
 0x286   :  { %1637 = vsyncpa [#allocation7], 1 }
 0x287   :  { %1638 = vsyncpa [#allocation5], 1 }

</bundles_post_ra>
